<compile_context>
chip_gen: v7x
topology: tpu7x:2x2x1
jax: 0.10.0
libtpu: 0.0.40
codegen_flags: <defaults>
</compile_context>

<pallas_src>
import functools

import jax
import jax.numpy as jnp
from jax import lax
from jax.experimental import pallas as pl
from jax.experimental.pallas import tpu as pltpu


_LANE = 128
_DEFAULT_MAX_ROW_BLOCK = 512            # shared (single row block) path at/below this
_FALLBACK_VMEM_BYTES = 64 * 1024 * 1024  # v7x per-TC VMEM (smallest current gen)


# ---------------------------------------------------------------------------
# Helpers
# ---------------------------------------------------------------------------
def _round_up(x, m):
    return (x + m - 1) // m * m


def _cdiv(a, b):
    return (a + b - 1) // b


def _vmem_capacity_bytes():
    try:
        cap = int(pltpu.get_tpu_info().vmem_capacity_bytes)
        if cap > 0:
            return cap
    except Exception:
        pass
    return _FALLBACK_VMEM_BYTES


def _pad2d(x, rows, cols):
    r, c = x.shape
    if r == rows and c == cols:
        return x
    return jnp.pad(x, ((0, rows - r), (0, cols - c)))


def _plan(ab, cd, itemsize, has_target, max_row_block):
    """Pick row-block / K-tile sizes from the per-generation VMEM capacity."""
    assert max_row_block % _LANE == 0
    cap = _vmem_capacity_bytes()
    budget = int(cap * 0.70)        # tiling budget (leave compiler headroom)
    vmem_limit = int(cap * 0.85)    # explicit scoped-VMEM limit for Mosaic

    abp = _round_up(ab, _LANE)      # lane-dense gram, dtype-safe sublane padding
    if abp <= max_row_block:
        tm, n_rb = abp, 1
    else:
        tm = max_row_block
        n_rb = _cdiv(abp, tm)
        abp = tm * n_rb
    shared = n_rb == 1

    # Resident, double-buffered f32 blocks: gram output (+ target for the loss).
    fixed = 2 * tm * abp * 4 * (2 if has_target else 1)
    # Double-buffered feature bytes per K column (shared path streams F once).
    per_k = 2 * abp * itemsize if shared else 2 * (tm + abp) * itemsize
    avail = max(budget - fixed, per_k * _LANE)
    tk_max = max(_LANE, (avail // per_k) // _LANE * _LANE)

    cdp = _round_up(cd, _LANE)
    if cdp <= tk_max:
        tk, n_k = cdp, 1
    else:
        n_k = _cdiv(cdp, tk_max)
        tk = _round_up(_cdiv(cdp, n_k), _LANE)   # minimize K padding
        n_k = _cdiv(cdp, tk)
    cdp = tk * n_k

    return dict(abp=abp, tm=tm, n_rb=n_rb, tk=tk, n_k=n_k, cdp=cdp,
                shared=shared, vmem_limit=vmem_limit)


# ---------------------------------------------------------------------------
# Kernel building blocks
# ---------------------------------------------------------------------------
def _nt_matmul(lhs, rhs):
    # lhs (tm, tk), rhs (abp, tk) -> (tm, abp): contract last dims, no transpose.
    return lax.dot_general(lhs, rhs,
                           dimension_numbers=(((1,), (1,)), ((), ())),
                           preferred_element_type=jnp.float32)


def _accumulate(lhs, rhs, g_ref):
    """K-tiled gram accumulation directly into the resident output block."""
    k = pl.program_id(1)
    part = _nt_matmul(lhs, rhs)

    @pl.when(k == 0)
    def _():
        g_ref[...] = part

    @pl.when(k > 0)
    def _():
        g_ref[...] += part


def _gram_epilogue(g_ref, scale):
    @pl.when(pl.program_id(1) == pl.num_programs(1) - 1)
    def _():
        g_ref[...] *= scale


def _loss_epilogue(g_ref, target_ref, loss_ref, scale, inv_count):
    @pl.when(pl.program_id(1) == pl.num_programs(1) - 1)
    def _():
        gram = g_ref[...] * scale
        g_ref[...] = gram
        diff = gram - target_ref[...].astype(jnp.float32)
        # Per-row-block partial loss; padded rows/cols are exactly zero on both
        # sides, so they contribute nothing. Divisor uses the real ab*ab.
        loss_ref[...] = jnp.sum(diff * diff, keepdims=True) * inv_count


# ---------------------------------------------------------------------------
# Kernels
# ---------------------------------------------------------------------------
def _gram_kernel_shared(feat_ref, g_ref, *, scale):
    f = feat_ref[...]
    _accumulate(f, f, g_ref)
    _gram_epilogue(g_ref, scale)


def _gram_kernel_split(lhs_ref, rhs_ref, g_ref, *, scale):
    _accumulate(lhs_ref[...], rhs_ref[...], g_ref)
    _gram_epilogue(g_ref, scale)


def _loss_kernel_shared(feat_ref, target_ref, g_ref, loss_ref, *, scale, inv_count):
    f = feat_ref[...]
    _accumulate(f, f, g_ref)
    _loss_epilogue(g_ref, target_ref, loss_ref, scale, inv_count)


def _loss_kernel_split(lhs_ref, rhs_ref, target_ref, g_ref, loss_ref, *,
                       scale, inv_count):
    _accumulate(lhs_ref[...], rhs_ref[...], g_ref)
    _loss_epilogue(g_ref, target_ref, loss_ref, scale, inv_count)


# ---------------------------------------------------------------------------
# Wrappers
# ---------------------------------------------------------------------------
def _gram_call(feats_p, plan, scale):
    abp, tm, tk = plan["abp"], plan["tm"], plan["tk"]
    grid = (plan["n_rb"], plan["n_k"])
    if plan["shared"]:
        kernel = functools.partial(_gram_kernel_shared, scale=scale)
        in_specs = [pl.BlockSpec((abp, tk), lambda i, k: (0, k))]
        args = (feats_p,)
    else:
        kernel = functools.partial(_gram_kernel_split, scale=scale)
        in_specs = [pl.BlockSpec((tm, tk), lambda i, k: (i, k)),
                    pl.BlockSpec((abp, tk), lambda i, k: (0, k))]
        args = (feats_p, feats_p)

    return pl.pallas_call(
        kernel,
        out_shape=jax.ShapeDtypeStruct((abp, abp), jnp.float32),
        grid_spec=pltpu.PrefetchScalarGridSpec(
            num_scalar_prefetch=0,
            grid=grid,
            in_specs=in_specs,
            out_specs=pl.BlockSpec((tm, abp), lambda i, k: (i, 0)),
        ),
        compiler_params=pltpu.CompilerParams(
            dimension_semantics=("parallel", "arbitrary"),
            vmem_limit_bytes=plan["vmem_limit"]),
    )(*args)


def gram_matrix(x, *, max_row_block=_DEFAULT_MAX_ROW_BLOCK):
    """x: (a, b, c, d) -> (a*b, a*b) gram matrix / (a*b*c*d), float32."""
    a, b, c, d = x.shape
    ab, cd = a * b, c * d
    feats = x.reshape(ab, cd)                      # keep original dtype (MXU-native)
    plan = _plan(ab, cd, feats.dtype.itemsize, has_target=False,
                 max_row_block=max_row_block)
    feats_p = _pad2d(feats, plan["abp"], plan["cdp"])
    scale = 1.0 / float(ab * cd)
    gram_p = _gram_call(feats_p, plan, scale)
    return gram_p[:ab, :ab]


class StyleLoss:
    """JAX/Pallas port of the PyTorch StyleLoss module.

    forward(x) returns x unchanged (as in PyTorch) and stores self.loss, the
    MSE between gram_matrix(x) and the target gram computed at construction.
    """

    def __init__(self, target_feature, *, max_row_block=_DEFAULT_MAX_ROW_BLOCK):
        self._max_row_block = max_row_block
        self.target = gram_matrix(target_feature, max_row_block=max_row_block)
        self.loss = None

    def forward(self, x):
        a, b, c, d = x.shape
        ab, cd = a * b, c * d
        feats = x.reshape(ab, cd)
        plan = _plan(ab, cd, feats.dtype.itemsize, has_target=True,
                     max_row_block=self._max_row_block)
        abp, tm, tk = plan["abp"], plan["tm"], plan["tk"]
        n_rb, n_k = plan["n_rb"], plan["n_k"]

        feats_p = _pad2d(feats, abp, plan["cdp"])
        target_p = _pad2d(self.target.astype(jnp.float32), abp, abp)
        scale = 1.0 / float(ab * cd)
        inv_count = 1.0 / float(ab * ab)

        target_spec = pl.BlockSpec((tm, abp), lambda i, k: (i, 0))
        if plan["shared"]:
            kernel = functools.partial(_loss_kernel_shared,
                                       scale=scale, inv_count=inv_count)
            in_specs = [pl.BlockSpec((abp, tk), lambda i, k: (0, k)), target_spec]
            args = (feats_p, target_p)
        else:
            kernel = functools.partial(_loss_kernel_split,
                                       scale=scale, inv_count=inv_count)
            in_specs = [pl.BlockSpec((tm, tk), lambda i, k: (i, k)),
                        pl.BlockSpec((abp, tk), lambda i, k: (0, k)),
                        target_spec]
            args = (feats_p, feats_p, target_p)

        gram_p, loss_parts = pl.pallas_call(
            kernel,
            out_shape=(
                jax.ShapeDtypeStruct((abp, abp), jnp.float32),
                jax.ShapeDtypeStruct((n_rb, 1), jnp.float32),
            ),
            grid_spec=pltpu.PrefetchScalarGridSpec(
                num_scalar_prefetch=0,
                grid=(n_rb, n_k),
                in_specs=in_specs,
                out_specs=(
                    pl.BlockSpec((tm, abp), lambda i, k: (i, 0)),
                    pl.BlockSpec((1, 1), lambda i, k: (i, 0)),
                ),
            ),
            compiler_params=pltpu.CompilerParams(
                dimension_semantics=("parallel", "arbitrary"),
                vmem_limit_bytes=plan["vmem_limit"]),
        )(*args)

        self.loss = jnp.sum(loss_parts)           # sum of per-row-block partials
        self._last_gram = gram_p[:ab, :ab]        # kept for inspection / testing
        return x

    __call__ = forward


# ---------------------------------------------------------------------------
# Reference (pure JAX) for sanity checks
# ---------------------------------------------------------------------------
def _gram_ref(x):
    a, b, c, d = x.shape
    f = x.reshape(a * b, c * d).astype(jnp.float32)
    return (f @ f.T) / float(a * b * c * d)


if __name__ == "__main__":
    key = jax.random.PRNGKey(0)
    k1, k2, k3, k4 = jax.random.split(key, 4)

    # Small-integer-valued f32 inputs: every product / partial sum is exactly
    # representable regardless of MXU matmul precision, so kernel and XLA
    # reference match tightly independent of default-precision behaviour.
    def make(k, shape):
        return jnp.round(jax.random.normal(k, shape, dtype=jnp.float32) * 3.0)

    # --- Test 1: NCHW feature maps, shared (single row-block) path ----------
    target_feature = make(k1, (2, 4, 16, 16))
    x = make(k2, (2, 4, 16, 16))

    module = StyleLoss(target_feature)
    out = module(x)
    jax.block_until_ready(out)
    jax.block_until_ready(module.loss)

    g_ref = _gram_ref(x)
    t_ref = _gram_ref(target_feature)
    loss_ref = jnp.mean((g_ref - t_ref) ** 2)

    assert out.shape == x.shape
    assert jnp.allclose(out, x)
    assert jnp.allclose(module.target, t_ref, rtol=1e-5, atol=1e-6)
    assert jnp.allclose(module._last_gram, g_ref, rtol=1e-5, atol=1e-6)
    assert jnp.allclose(module.loss, loss_ref, rtol=1e-4, atol=1e-8)

    # --- Test 2: larger ab, forced small row block -> split (row-parallel) path
    tf2 = make(k3, (2, 128, 4, 8))
    x2 = make(k4, (2, 128, 4, 8))

    m2 = StyleLoss(tf2, max_row_block=128)
    out2 = m2(x2)
    jax.block_until_ready(out2)
    jax.block_until_ready(m2.loss)

    g2_ref = _gram_ref(x2)
    t2_ref = _gram_ref(tf2)
    l2_ref = jnp.mean((g2_ref - t2_ref) ** 2)

    assert jnp.allclose(out2, x2)
    assert jnp.allclose(m2.target, t2_ref, rtol=1e-5, atol=1e-6)
    assert jnp.allclose(m2._last_gram, g2_ref, rtol=1e-5, atol=1e-6)
    assert jnp.allclose(m2.loss, l2_ref, rtol=1e-4, atol=1e-8)

    print("KERNEL_OK")
</pallas_src>

<mosaic_0001>
module attributes {stable_mosaic.version = 11 : i64} {
  func.func @_gram_kernel_shared(%arg0: i32, %arg1: i32, %arg2: memref<128x256xf32, #tpu.memory_space<vmem>>, %arg3: memref<128x128xf32, #tpu.memory_space<vmem>>) attributes {dimension_semantics = [#tpu.dimension_semantics<parallel>, #tpu.dimension_semantics<arbitrary>], iteration_bounds = array<i64: 1, 1>, scalar_prefetch = 0 : i64, scratch_operands = 0 : i64, tpu.core_type = #tpu.core_type<tc>, window_params = [{transform_indices = @transform_0, window_bounds = array<i64: 128, 256>}, {transform_indices = @transform_1, window_bounds = array<i64: 128, 128>}]} {
    %c0 = arith.constant 0 : index
    %c0_0 = arith.constant 0 : index
    %0 = vector.load %arg2[%c0, %c0_0] : memref<128x256xf32, #tpu.memory_space<vmem>>, vector<128x256xf32>
    %cst = arith.constant dense<0.000000e+00> : vector<128x128xf32>
    %1 = tpu.matmul %0, %0, %cst {dimension_numbers = #tpu.dot_dimension_numbers<[1], [1], [0], [0], [0, 0, 1, 0], [], []>} : vector<128x256xf32>, vector<128x256xf32>, vector<128x128xf32> -> vector<128x128xf32>
    %c0_i32 = arith.constant 0 : i32
    %2 = arith.cmpi eq, %arg1, %c0_i32 : i32
    %3 = arith.extui %2 : i1 to i32
    %c0_i32_1 = arith.constant 0 : i32
    %4 = arith.cmpi ne, %3, %c0_i32_1 : i32
    scf.if %4 {
      %c0_6 = arith.constant 0 : index
      %c0_7 = arith.constant 0 : index
      %11 = vector.load %arg3[%c0_6, %c0_7] : memref<128x128xf32, #tpu.memory_space<vmem>>, vector<128x128xf32>
      tpu.vector_store %arg3[%c0_6, %c0_7], %1 {strides = array<i32>} : memref<128x128xf32, #tpu.memory_space<vmem>>, vector<128x128xf32>,
    } else {
    }
    %c0_i32_2 = arith.constant 0 : i32
    %5 = arith.cmpi sgt, %arg1, %c0_i32_2 : i32
    %6 = arith.extui %5 : i1 to i32
    %c0_i32_3 = arith.constant 0 : i32
    %7 = arith.cmpi ne, %6, %c0_i32_3 : i32
    scf.if %7 {
      %c0_6 = arith.constant 0 : index
      %c0_7 = arith.constant 0 : index
      %11 = vector.load %arg3[%c0_6, %c0_7] : memref<128x128xf32, #tpu.memory_space<vmem>>, vector<128x128xf32>
      %12 = arith.addf %11, %1 : vector<128x128xf32>
      %c0_8 = arith.constant 0 : index
      %c0_9 = arith.constant 0 : index
      %13 = vector.load %arg3[%c0_8, %c0_9] : memref<128x128xf32, #tpu.memory_space<vmem>>, vector<128x128xf32>
      tpu.vector_store %arg3[%c0_8, %c0_9], %12 {strides = array<i32>} : memref<128x128xf32, #tpu.memory_space<vmem>>, vector<128x128xf32>,
    } else {
    }
    %c0_i32_4 = arith.constant 0 : i32
    %8 = arith.cmpi eq, %arg1, %c0_i32_4 : i32
    %9 = arith.extui %8 : i1 to i32
    %c0_i32_5 = arith.constant 0 : i32
    %10 = arith.cmpi ne, %9, %c0_i32_5 : i32
    scf.if %10 {
      %c0_6 = arith.constant 0 : index
      %c0_7 = arith.constant 0 : index
      %11 = vector.load %arg3[%c0_6, %c0_7] : memref<128x128xf32, #tpu.memory_space<vmem>>, vector<128x128xf32>
      %cst_8 = arith.constant 4.8828125E-4 : f32
      %12 = vector.broadcast %cst_8 : f32 to vector<128x128xf32>
      %13 = arith.mulf %11, %12 : vector<128x128xf32>
      %c0_9 = arith.constant 0 : index
      %c0_10 = arith.constant 0 : index
      %14 = vector.load %arg3[%c0_9, %c0_10] : memref<128x128xf32, #tpu.memory_space<vmem>>, vector<128x128xf32>
      tpu.vector_store %arg3[%c0_9, %c0_10], %13 {strides = array<i32>} : memref<128x128xf32, #tpu.memory_space<vmem>>, vector<128x128xf32>,
    } else {
    }
    return
  }
  func.func @transform_0(%arg0: i32, %arg1: i32) -> (i32, i32) {
    %c0_i32 = arith.constant 0 : i32
    %c0_i32_0 = arith.constant 0 : i32
    return %c0_i32, %arg1 : i32, i32
  }
  func.func @transform_1(%arg0: i32, %arg1: i32) -> (i32, i32) {
    %c0_i32 = arith.constant 0 : i32
    %c0_i32_0 = arith.constant 0 : i32
    return %arg0, %c0_i32 : i32, i32
  }
}

</mosaic_0001>

<bundles_post_ra>
// kernel: tpu_custom_call.1
= control target key start
LH: loop header
LB: loop body
LE: loop exit
PB: predicated region body
PF: predicated region fallthrough
CT: control target
= control target key end

     0   :  { %6 = vsyncpa [#allocation3], 0  ;;  %s542_s0 = inlined_call_operand.hbm [shape: f32[128,256], index: 0, kind: input, shape index: {}]   ;;  %s543_s1 = inlined_call_operand.hbm [shape: f32[128,128], index: 1, kind: output, shape index: {}]  }
   0x1   :  { %7 = vsyncpa [#allocation4], 0  ;;  %s442_s6 = smov [#allocation2]   ;;  %s394_s10 = scalar_lea.hbm %s542_s0, 4096 }
   0x2   :  { %s13_s7 = sshll.u32 %s442_s6, 4  ;;  %p395_p0 = scmp.ne.s32.totalorder %s542_s0, %s394_s10  ;;  %s14_s7 = int_to_ptr.vmem [resolvable:$true] %s13_s7 }
   0x3   :  { %p398_p1 = scmp.lt.u32.totalorder %s394_s10, %s542_s0 }
   0x5   :  { %p400_p2 = pnand %p398_p1, %p395_p0 }
   0x7   :  { %403 = shalt.err (!%p400_p2)
}
   0x8   :  { %s404_s15 = scalar_lea.vmem %s14_s7, 4096  ;;  %p409_p4 = scmp.lt.s32.totalorder %s14_s7, %s14_s7 }
   0x9   :  { %p405_p3 = scmp.ne.s32.totalorder %s14_s7, %s404_s15  ;;  %p410_p5 = scmp.lt.s32.totalorder %s404_s15, %s404_s15 }
   0xb   :  { %p411_p6 = por %p410_p5, %p409_p4 }
   0xd   :  { %p412_p7 = pnand %p411_p6, %p405_p3 }
   0xf   :  { %415 = shalt.err (!%p412_p7)
}
  0x10   :  { %s443_s16 = smov 256   ;;  %s444_s17 = smov 16  }
  0x11   :  { %19 = dma.hbm_to_vmem [thread:$0]  %s542_s0, 4096, %s14_s7, [#allocation3], %s443_s16, %s443_s16, %s444_s17  }
  0x12   :  { %438 = dma.done.wait [#allocation3], 4096  }
  0x13   :  { %439 = vsyncadd [#allocation3], 4294963200  ;;  %v24_v0 = vld [vmem:[#allocation2 + $0x8] sm:$0xff]  ;;  %v470_v1 = vld [vmem:[#allocation2 + $0x18] sm:$0xff]  ;;  %s445_s0 = smov [#allocation5]  }
  0x14   :  { %v472_v2 = vld [vmem:[#allocation2] sm:$0xff]  ;;  %v340_v3 = vpack.c.bf16 %v470_v1, %v24_v0  ;;  %v475_v4 = vld [vmem:[#allocation2 + $0x10] sm:$0xff]  ;;  %v477_v5 = vld [vmem:[#allocation2 + $0x28] sm:$0xff]  ;;  %119 = vmatprep.mubr.f32.mxu0 %v24_v0  ;;  %s328_s20 = sshll.u32 %s445_s0, 4  ;;  %s329_s20 = int_to_ptr.vmem [resolvable:$true] %s328_s20 }
  0x15   :  { %v479_v6 = vld [vmem:[#allocation2 + $0x38] sm:$0xff]  ;;  %v342_v7 = vpack.c.bf16 %v475_v4, %v472_v2  ;;  %v485_v9 = vld [vmem:[#allocation2 + $0x20] sm:$0xff]  ;;  %v487_v10 = vld [vmem:[#allocation2 + $0x30] sm:$0xff]  ;;  %s416_s21 = scalar_lea.vmem %s329_s20, 2048  ;;  %p421_p9 = scmp.lt.s32.totalorder %s329_s20, %s329_s20 }
  0x16   :  { %v344_v8 = vpack.c.bf16 %v479_v6, %v477_v5  ;;  %341 = vmatprep.subr.bf16.mxu0 %v340_v3  ;;  %372 = vmatprep.subr.bf16.mxu1 %v340_v3  ;;  %v40_v11 = vld [vmem:[#allocation2 + $0x88] sm:$0xff]  ;;  %v491_v13 = vld [vmem:[#allocation2 + $0x58] sm:$0xff]  ;;  %v346_v14 = vpack.c.bf16 %v487_v10, %v485_v9  ;;  %v497_v16 = vld [vmem:[#allocation2 + $0x40] sm:$0xff]  ;;  %p417_p8 = scmp.ne.s32.totalorder %s329_s20, %s416_s21  ;;  %p422_p10 = scmp.lt.s32.totalorder %s416_s21, %s416_s21 }
  0x17   :  { %343 = vmatpush1.bf16.xpose.msra.mxu0 %v342_v7  ;;  %380 = vmatpush1.bf16.xpose.msra.mxu1 %v342_v7  ;;  %v489_v12 = vld [vmem:[#allocation2 + $0x48] sm:$0xff]  ;;  %v499_v17 = vld [vmem:[#allocation2 + $0x50] sm:$0xff]  ;;  %v503_v19 = vld [vmem:[#allocation2 + $0x78] sm:$0xff] }
  0x18   :  { %345 = vmatprep.subr.bf16.mxu0 %v344_v8  ;;  %373 = vmatprep.subr.bf16.mxu1 %v344_v8  ;;  %v348_v15 = vpack.c.bf16 %v491_v13, %v489_v12  ;;  %v501_v18 = vld [vmem:[#allocation2 + $0x68] sm:$0xff]  ;;  %v350_v20 = vpack.c.bf16 %v499_v17, %v497_v16  ;;  %v509_v22 = vld [vmem:[#allocation2 + $0x60] sm:$0xff]  ;;  %v511_v23 = vld [vmem:[#allocation2 + $0x70] sm:$0xff]  ;;  %p423_p11 = por %p422_p10, %p421_p9 }
  0x19   :  { %159 = vmatprep.mubr.f32.mxu1 %v40_v11  ;;  %v352_v21 = vpack.c.bf16 %v503_v19, %v501_v18  ;;  %v42_v24 = vld [vmem:[#allocation2 + $0x98] sm:$0xff]  ;;  %v354_v25 = vpack.c.bf16 %v511_v23, %v509_v22  ;;  %v39_v27 = vld [vmem:[#allocation2 + $0x80] sm:$0xff]  ;;  %v41_v28 = vld [vmem:[#allocation2 + $0x90] sm:$0xff] }
  0x1a   :  { %v356_v26 = vpack.c.bf16 %v42_v24, %v40_v11  ;;  %v44_v29 = vld [vmem:[#allocation2 + $0xa8] sm:$0xff]  ;;  %v46_v30 = vld [vmem:[#allocation2 + $0xb8] sm:$0xff]  ;;  %v358_v31 = vpack.c.bf16 %v41_v28, %v39_v27  ;;  %v43_v33 = vld [vmem:[#allocation2 + $0xa0] sm:$0xff]  ;;  %p424_p12 = pnand %p423_p11, %p417_p8 }
  0x1b   :  { %v360_v32 = vpack.c.bf16 %v46_v30, %v44_v29  ;;  %v45_v34 = vld [vmem:[#allocation2 + $0xb0] sm:$0xff]  ;;  %v48_v35 = vld [vmem:[#allocation2 + $0xc8] sm:$0xff]  ;;  %v50_v36 = vld [vmem:[#allocation2 + $0xd8] sm:$0xff] }
  0x1c   :  { %v362_v37 = vpack.c.bf16 %v45_v34, %v43_v33  ;;  %v364_v38 = vpack.c.bf16 %v50_v36, %v48_v35  ;;  %v47_v39 = vld [vmem:[#allocation2 + $0xc0] sm:$0xff]  ;;  %v49_v40 = vld [vmem:[#allocation2 + $0xd0] sm:$0xff]  ;;  %v52_v41 = vld [vmem:[#allocation2 + $0xe8] sm:$0xff] }
  0x1d   :  { %v54_v42 = vld [vmem:[#allocation2 + $0xf8] sm:$0xff]  ;;  %v366_v43 = vpack.c.bf16 %v49_v40, %v47_v39  ;;  %v51_v45 = vld [vmem:[#allocation2 + $0xe0] sm:$0xff]  ;;  %v53_v46 = vld [vmem:[#allocation2 + $0xf0] sm:$0xff] }
  0x1e   :  { %v368_v44 = vpack.c.bf16 %v54_v42, %v52_v41  ;;  %v370_v47 = vpack.c.bf16 %v53_v46, %v51_v45 }
  0x1f   :  { %347 = vmatpush1.bf16.xpose.msra.mxu0 %v346_v14  ;;  %381 = vmatpush1.bf16.xpose.msra.mxu1 %v346_v14 }
  0x20   :  { %349 = vmatprep.subr.bf16.mxu0 %v348_v15  ;;  %374 = vmatprep.subr.bf16.mxu1 %v348_v15 }
  0x27   :  { %351 = vmatpush1.bf16.xpose.msra.mxu0 %v350_v20  ;;  %382 = vmatpush1.bf16.xpose.msra.mxu1 %v350_v20 }
  0x28   :  { %353 = vmatprep.subr.bf16.mxu0 %v352_v21  ;;  %375 = vmatprep.subr.bf16.mxu1 %v352_v21 }
  0x2f   :  { %355 = vmatpush1.bf16.xpose.msra.mxu0 %v354_v25  ;;  %383 = vmatpush1.bf16.xpose.msra.mxu1 %v354_v25 }
  0x30   :  { %357 = vmatprep.subr.bf16.mxu0 %v356_v26  ;;  %376 = vmatprep.subr.bf16.mxu1 %v356_v26 }
  0x37   :  { %359 = vmatpush1.bf16.xpose.msra.mxu0 %v358_v31  ;;  %384 = vmatpush1.bf16.xpose.msra.mxu1 %v358_v31 }
  0x38   :  { %361 = vmatprep.subr.bf16.mxu0 %v360_v32  ;;  %377 = vmatprep.subr.bf16.mxu1 %v360_v32 }
  0x3f   :  { %363 = vmatpush1.bf16.xpose.msra.mxu0 %v362_v37  ;;  %385 = vmatpush1.bf16.xpose.msra.mxu1 %v362_v37 }
  0x40   :  { %365 = vmatprep.subr.bf16.mxu0 %v364_v38  ;;  %378 = vmatprep.subr.bf16.mxu1 %v364_v38 }
  0x47   :  { %367 = vmatpush1.bf16.xpose.msra.mxu0 %v366_v43  ;;  %386 = vmatpush1.bf16.xpose.msra.mxu1 %v366_v43 }
  0x48   :  { %369 = vmatprep.subr.bf16.mxu0 %v368_v44  ;;  %379 = vmatprep.subr.bf16.mxu1 %v368_v44 }
  0x4f   :  { %371 = vmatpush1.bf16.xpose.msra.mxu0 %v370_v47  ;;  %387 = vmatpush1.bf16.xpose.msra.mxu1 %v370_v47 }
  0x56   :  { %120 = vmatmul.mubr.f32.vlgmr.msra.gmra.mrb[0].mxu0 %v472_v2  ;;  %160 = vmatmul.mubr.f32.vlgmr.msra.gmra.mrb[0].mxu1 %v39_v27 }
  0x57   :  { %124 = vmatprep.mubr.f32.mxu0 %v470_v1  ;;  %164 = vmatprep.mubr.f32.mxu1 %v42_v24 }
  0x5a   :  { %125 = vmatmul.mubr.f32.gmra.mrb[2].mxu0 %v475_v4  ;;  %165 = vmatmul.mubr.f32.gmra.mrb[2].mxu1 %v41_v28 }
  0x5b   :  { %129 = vmatprep.mubr.f32.mxu0 %v477_v5  ;;  %169 = vmatprep.mubr.f32.mxu1 %v44_v29 }
  0x5e   :  { %130 = vmatmul.mubr.f32.gmra.mrb[4].mxu0 %v485_v9  ;;  %170 = vmatmul.mubr.f32.gmra.mrb[4].mxu1 %v43_v33 }
  0x5f   :  { %134 = vmatprep.mubr.f32.mxu0 %v479_v6  ;;  %174 = vmatprep.mubr.f32.mxu1 %v46_v30 }
  0x62   :  { %135 = vmatmul.mubr.f32.gmra.mrb[6].mxu0 %v487_v10  ;;  %175 = vmatmul.mubr.f32.gmra.mrb[6].mxu1 %v45_v34 }
  0x63   :  { %139 = vmatprep.mubr.f32.mxu0 %v489_v12  ;;  %179 = vmatprep.mubr.f32.mxu1 %v48_v35 }
  0x66   :  { %140 = vmatmul.mubr.f32.gmra.mrb[8].mxu0 %v497_v16  ;;  %180 = vmatmul.mubr.f32.gmra.mrb[8].mxu1 %v47_v39 }
  0x67   :  { %144 = vmatprep.mubr.f32.mxu0 %v491_v13  ;;  %184 = vmatprep.mubr.f32.mxu1 %v50_v36 }
  0x6a   :  { %145 = vmatmul.mubr.f32.gmra.mrb[10].mxu0 %v499_v17  ;;  %185 = vmatmul.mubr.f32.gmra.mrb[10].mxu1 %v49_v40 }
  0x6b   :  { %149 = vmatprep.mubr.f32.mxu0 %v501_v18  ;;  %189 = vmatprep.mubr.f32.mxu1 %v52_v41 }
  0x6e   :  { %150 = vmatmul.mubr.f32.gmra.mrb[12].mxu0 %v509_v22  ;;  %190 = vmatmul.mubr.f32.gmra.mrb[12].mxu1 %v51_v45 }
  0x6f   :  { %154 = vmatprep.mubr.f32.mxu0 %v503_v19  ;;  %194 = vmatprep.mubr.f32.mxu1 %v54_v42 }
  0x72   :  { %155 = vmatmul.mubr.f32.gmra.mrb[14].mxu0 %v511_v23  ;;  %195 = vmatmul.mubr.f32.gmra.mrb[14].mxu1 %v53_v46 }
 0x129   :  { %v121_v48 = vpop.f32.mrb[0].mxu0  ;;  %v161_v49 = vpop.f32.mrb[0].mxu1 }
 0x12a   :  { %v291_v50 = vmul.f32 0.00048828125, %v121_v48  ;;  %v299_v51 = vmul.f32 0.00048828125, %v161_v49  ;;  %v123_v52 = vpop.f32.mrb[1].mxu0  ;;  %v163_v53 = vpop.f32.mrb[1].mxu1 }
 0x12c   :  { %307 = vst [vmem:[#allocation5] sm:$0xff] %v291_v50  ;;  %315 = vst [vmem:[#allocation5 + $0x40] sm:$0xff] %v299_v51 }
 0x12d   :  { %v126_v54 = vpop.f32.mrb[2].mxu0  ;;  %v166_v55 = vpop.f32.mrb[2].mxu1 }
 0x12e   :  { %v292_v56 = vmul.f32 0.00048828125, %v126_v54  ;;  %v300_v57 = vmul.f32 0.00048828125, %v166_v55  ;;  %v128_v58 = vpop.f32.mrb[3].mxu0  ;;  %v168_v59 = vpop.f32.mrb[3].mxu1 }
 0x130   :  { %308 = vst [vmem:[#allocation5 + $0x8] sm:$0xff] %v292_v56  ;;  %316 = vst [vmem:[#allocation5 + $0x48] sm:$0xff] %v300_v57 }
 0x131   :  { %v131_v60 = vpop.f32.mrb[4].mxu0  ;;  %v171_v61 = vpop.f32.mrb[4].mxu1 }
 0x132   :  { %v293_v62 = vmul.f32 0.00048828125, %v131_v60  ;;  %v301_v63 = vmul.f32 0.00048828125, %v171_v61  ;;  %v133_v0 = vpop.f32.mrb[5].mxu0  ;;  %v173_v1 = vpop.f32.mrb[5].mxu1 }
 0x134   :  { %309 = vst [vmem:[#allocation5 + $0x10] sm:$0xff] %v293_v62  ;;  %317 = vst [vmem:[#allocation5 + $0x50] sm:$0xff] %v301_v63 }
 0x135   :  { %v136_v2 = vpop.f32.mrb[6].mxu0  ;;  %v176_v3 = vpop.f32.mrb[6].mxu1 }
 0x136   :  { %v294_v4 = vmul.f32 0.00048828125, %v136_v2  ;;  %v302_v5 = vmul.f32 0.00048828125, %v176_v3  ;;  %v138_v6 = vpop.f32.mrb[7].mxu0  ;;  %v178_v7 = vpop.f32.mrb[7].mxu1 }
 0x138   :  { %310 = vst [vmem:[#allocation5 + $0x18] sm:$0xff] %v294_v4  ;;  %318 = vst [vmem:[#allocation5 + $0x58] sm:$0xff] %v302_v5 }
 0x139   :  { %v141_v8 = vpop.f32.mrb[8].mxu0  ;;  %v181_v9 = vpop.f32.mrb[8].mxu1 }
 0x13a   :  { %v295_v10 = vmul.f32 0.00048828125, %v141_v8  ;;  %v303_v11 = vmul.f32 0.00048828125, %v181_v9  ;;  %v143_v12 = vpop.f32.mrb[9].mxu0  ;;  %v183_v13 = vpop.f32.mrb[9].mxu1 }
 0x13c   :  { %311 = vst [vmem:[#allocation5 + $0x20] sm:$0xff] %v295_v10  ;;  %319 = vst [vmem:[#allocation5 + $0x60] sm:$0xff] %v303_v11 }
 0x13d   :  { %v146_v14 = vpop.f32.mrb[10].mxu0  ;;  %v186_v15 = vpop.f32.mrb[10].mxu1 }
 0x13e   :  { %v296_v16 = vmul.f32 0.00048828125, %v146_v14  ;;  %v304_v17 = vmul.f32 0.00048828125, %v186_v15  ;;  %v148_v18 = vpop.f32.mrb[11].mxu0  ;;  %v188_v19 = vpop.f32.mrb[11].mxu1 }
 0x140   :  { %312 = vst [vmem:[#allocation5 + $0x28] sm:$0xff] %v296_v16  ;;  %320 = vst [vmem:[#allocation5 + $0x68] sm:$0xff] %v304_v17 }
 0x141   :  { %v151_v20 = vpop.f32.mrb[12].mxu0  ;;  %v191_v21 = vpop.f32.mrb[12].mxu1 }
 0x142   :  { %v297_v22 = vmul.f32 0.00048828125, %v151_v20  ;;  %v305_v23 = vmul.f32 0.00048828125, %v191_v21  ;;  %v153_v24 = vpop.f32.mrb[13].mxu0  ;;  %v193_v25 = vpop.f32.mrb[13].mxu1 }
 0x144   :  { %313 = vst [vmem:[#allocation5 + $0x30] sm:$0xff] %v297_v22  ;;  %321 = vst [vmem:[#allocation5 + $0x70] sm:$0xff] %v305_v23 }
 0x145   :  { %v156_v26 = vpop.f32.mrb[14].mxu0  ;;  %v196_v27 = vpop.f32.mrb[14].mxu1 }
 0x146   :  { %v298_v28 = vmul.f32 0.00048828125, %v156_v26  ;;  %v306_v29 = vmul.f32 0.00048828125, %v196_v27  ;;  %v158_v30 = vpop.f32.mrb[15].mxu0  ;;  %v198_v31 = vpop.f32.mrb[15].mxu1 }
 0x148   :  { %314 = vst [vmem:[#allocation5 + $0x38] sm:$0xff] %v298_v28  ;;  %322 = vst [vmem:[#allocation5 + $0x78] sm:$0xff] %v306_v29 }
 0x149   :  { %427 = shalt.err (!%p424_p12)
}
 0x14a   :  { %s428_s24 = scalar_lea.hbm %s543_s1, 2048 }
 0x14b   :  { %p429_p13 = scmp.ne.s32.totalorder %s543_s1, %s428_s24  ;;  %p432_p0 = scmp.lt.u32.totalorder %s428_s24, %s543_s1 }
 0x14d   :  { %p434_p1 = pnand %p432_p0, %p429_p13 }
 0x14f   :  { %437 = shalt.err (!%p434_p1)
}
 0x150   :  { %s446_s29 = smov 128   ;;  %s447_s30 = smov 8  }
 0x151   :  { %334 = dma.vmem_to_hbm [thread:$0]  %s329_s20, 2048, %s543_s1, [#allocation4], %s446_s29, %s446_s29, %s447_s30  }
 0x152   :  { %440 = dma.done.wait [#allocation4], 2048  }
 0x153   :  { %441 = vsyncadd [#allocation4], 4294965248 }
 0x154   :  { %338 = vsyncpa [#allocation3], 1 }
 0x155   :  { %339 = vsyncpa [#allocation4], 1 }

</bundles_post_ra>
